<compile_context>
chip_gen: v5e
topology: v5e:2x2
jax: 0.10.0
libtpu: 0.0.40
codegen_flags: <defaults>
</compile_context>

<pallas_src>
import functools

import jax
import jax.numpy as jnp
import numpy as np
from jax import lax
from jax.experimental import pallas as pl
from jax.experimental.pallas import tpu as pltpu


def _ar_kernel(x_ref, o_ref, *, K, T):
    """One grid step = a block of BCB (batch*channel) slabs.

    x_ref : (BCB, K, T)       input slabs
    o_ref : (BCB, K^3, 3*T)   fused output, o[s, m, 3t+j] = tap_j(x)[s, row_j(m), t]
    """
    BCB = x_ref.shape[0]
    x = x_ref[...]                                    # (BCB, K, T)
    dt = x.dtype
    W = 3 * T

    # Unfold's zero padding along T, done in-kernel.
    zero_col = jnp.zeros((BCB, K, 1), dt)
    xp = jnp.concatenate([zero_col, x, zero_col], axis=-1)          # (BCB, K, T+2)

    # Column interleave FIRST, at K rows (cheap): xi[s, r, 3t+j] = xp[s, r, t+j]
    #   = x[s, r, t+j-1] with zeros at the boundaries.
    xi = jnp.concatenate([xp[:, :, t:t + 3] for t in range(T)], axis=-1)   # (BCB, K, 3T)

    # Row spread into the K^3 "m" axis with the three static patterns
    #   d0 = m // K^2, d1 = (m // K) % K, d2 = m % K
    # built from pure sublane broadcasts + concatenation (no gathers / selects over rows).
    def rows(i, reps):
        return jnp.broadcast_to(xi[:, i:i + 1, :], (BCB, reps, W))

    s_self = jnp.concatenate([rows(i, K * K) for i in range(K)], axis=1)   # rows follow d0
    inner = jnp.concatenate([rows(i, K) for i in range(K)], axis=1)        # (BCB, K^2, 3T)
    s_prev = jnp.concatenate([inner] * K, axis=1)                          # rows follow d1
    s_next = jnp.concatenate([xi] * (K * K), axis=1)                       # rows follow d2

    # Lane-phase select: column q = 3t + j.
    #   j == 0 -> prev tap (row d1), j == 1 -> self tap (row d0), j == 2 -> next tap (row d2)
    j3 = lax.broadcasted_iota(jnp.int32, (1, 1, 3), 2)
    j_of_q = jnp.concatenate([j3] * T, axis=-1)                            # (1, 1, 3T)
    out = jnp.where(j_of_q == 0, s_prev, jnp.where(j_of_q == 1, s_self, s_next))
    o_ref[...] = out.astype(o_ref.dtype)


def ar_transformer_layer(x, k, traj_length, *, vmem_budget_bytes=8 * 1024 * 1024):
    """Pallas implementation of ARTransformerLayer.forward. x: (B, C, K, T) float."""
    K, T = k, traj_length
    B, C = x.shape[0], x.shape[1]
    assert x.shape[2] == K and x.shape[3] == T
    BC = B * C
    K3 = K ** 3

    x2 = x.reshape(BC, K, T)      # free row-major view

    # Choose how many (b, c) slabs per grid step: largest divisor of BC whose padded,
    # double-buffered footprint (plus intermediates headroom) fits a conservative VMEM
    # budget (kept small enough for v7x's 64 MiB VMEM / 32 MiB scoped default).
    def _pad(v, m):
        return ((v + m - 1) // m) * m

    bytes_per_slab = x.dtype.itemsize * (
        _pad(K, 8) * _pad(T, 128)          # padded input tile
        + K3 * _pad(3 * T, 128))           # padded output tile
    per_slab = 8 * bytes_per_slab          # 2x double buffering + intermediates headroom
    cap = max(1, vmem_budget_bytes // per_slab)
    bcb = 1
    for d in range(1, BC + 1):
        if BC % d == 0 and d <= cap:
            bcb = d

    in_bytes = BC * K * T * x.dtype.itemsize
    out_bytes = BC * K3 * 3 * T * x.dtype.itemsize

    kernel = functools.partial(_ar_kernel, K=K, T=T)
    out = pl.pallas_call(
        kernel,
        out_shape=jax.ShapeDtypeStruct((BC, K3, 3 * T), x.dtype),
        grid=(BC // bcb,),
        in_specs=[pl.BlockSpec((bcb, K, T), lambda i: (i, 0, 0))],
        out_specs=pl.BlockSpec((bcb, K3, 3 * T), lambda i: (i, 0, 0)),
        compiler_params=pltpu.CompilerParams(
            dimension_semantics=("parallel",)),
        cost_estimate=pl.CostEstimate(
            flops=0, transcendentals=0, bytes_accessed=in_bytes + out_bytes),
    )(x2)

    # Final view back to the module's output shape (pure metadata reshape).
    return out.reshape(B, C, K3, 3 * T)


def reference_forward(x, k, traj_length):
    """Pure-JAX/numpy re-implementation of the PyTorch forward for verification."""
    K, T = k, traj_length
    B, C = x.shape[0], x.shape[1]
    xp = jnp.pad(x, ((0, 0), (0, 0), (0, 0), (1, 1)))
    # Unfold(kernel=[K,3], pad=[0,1]) then view(B, C, K, 3, T):
    u = jnp.stack([xp[:, :, :, t:t + 3] for t in range(T)], axis=-1)   # (B,C,K,3,T)
    ori = np.arange(K)
    idx0 = np.tile(ori.reshape(K, 1, 1), (1, K, K)).reshape(-1)
    idx1 = np.tile(ori.reshape(1, K, 1), (K, 1, K)).reshape(-1)
    idx2 = np.tile(ori.reshape(1, 1, K), (K, K, 1)).reshape(-1)
    idx_all = np.stack([idx1, idx0, idx2], axis=1)                     # (K^3, 3)
    g = u[:, :, idx_all, np.arange(3)[None, :], :]                     # (B,C,K^3,3,T)
    return jnp.transpose(g, (0, 1, 2, 4, 3)).reshape(B, C, K ** 3, 3 * T)


if __name__ == "__main__":
    key = jax.random.PRNGKey(0)
    # Two cases: one single-step grid, one with multiple blocked grid steps.
    for (B, C, K, T) in [(2, 4, 4, 8), (4, 16, 4, 8)]:
        key, sub = jax.random.split(key)
        x = jax.random.normal(sub, (B, C, K, T), dtype=jnp.float32)

        out = jax.block_until_ready(ar_transformer_layer(x, K, T))
        ref = reference_forward(x, K, T)

        assert out.shape == (B, C, K ** 3, 3 * T), out.shape
        np.testing.assert_allclose(np.asarray(out), np.asarray(ref), rtol=0, atol=0)

    print("KERNEL_OK")
</pallas_src>

<mosaic_0001>
module attributes {stable_mosaic.version = 11 : i64} {
  func.func @_ar_kernel(%arg0: i32, %arg1: memref<8x4x8xf32, #tpu.memory_space<vmem>>, %arg2: memref<8x64x24xf32, #tpu.memory_space<vmem>>) attributes {dimension_semantics = [#tpu.dimension_semantics<parallel>], iteration_bounds = array<i64: 1>, scalar_prefetch = 0 : i64, scratch_operands = 0 : i64, tpu.core_type = #tpu.core_type<tc>, window_params = [{transform_indices = @transform_0, window_bounds = array<i64: 8, 4, 8>}, {transform_indices = @transform_1, window_bounds = array<i64: 8, 64, 24>}]} {
    %c0 = arith.constant 0 : index
    %c0_0 = arith.constant 0 : index
    %c0_1 = arith.constant 0 : index
    %0 = vector.load %arg1[%c0, %c0_0, %c0_1] : memref<8x4x8xf32, #tpu.memory_space<vmem>>, vector<8x4x8xf32>
    %cst = arith.constant 0.000000e+00 : f32
    %1 = vector.broadcast %cst : f32 to vector<8x4x1xf32>
    %2 = tpu.concatenate %1, %0, %1 in 2 : vector<8x4x1xf32>, vector<8x4x8xf32>, vector<8x4x1xf32> -> vector<8x4x10xf32>
    %3 = vector.extract_strided_slice %2 {offsets = [0, 0, 0], sizes = [8, 4, 3], strides = [1, 1, 1]} : vector<8x4x10xf32> to vector<8x4x3xf32>
    %4 = vector.extract_strided_slice %2 {offsets = [0, 0, 1], sizes = [8, 4, 3], strides = [1, 1, 1]} : vector<8x4x10xf32> to vector<8x4x3xf32>
    %5 = vector.extract_strided_slice %2 {offsets = [0, 0, 2], sizes = [8, 4, 3], strides = [1, 1, 1]} : vector<8x4x10xf32> to vector<8x4x3xf32>
    %6 = vector.extract_strided_slice %2 {offsets = [0, 0, 3], sizes = [8, 4, 3], strides = [1, 1, 1]} : vector<8x4x10xf32> to vector<8x4x3xf32>
    %7 = vector.extract_strided_slice %2 {offsets = [0, 0, 4], sizes = [8, 4, 3], strides = [1, 1, 1]} : vector<8x4x10xf32> to vector<8x4x3xf32>
    %8 = vector.extract_strided_slice %2 {offsets = [0, 0, 5], sizes = [8, 4, 3], strides = [1, 1, 1]} : vector<8x4x10xf32> to vector<8x4x3xf32>
    %9 = vector.extract_strided_slice %2 {offsets = [0, 0, 6], sizes = [8, 4, 3], strides = [1, 1, 1]} : vector<8x4x10xf32> to vector<8x4x3xf32>
    %10 = vector.extract_strided_slice %2 {offsets = [0, 0, 7], sizes = [8, 4, 3], strides = [1, 1, 1]} : vector<8x4x10xf32> to vector<8x4x3xf32>
    %11 = tpu.concatenate %3, %4, %5, %6, %7, %8, %9, %10 in 2 : vector<8x4x3xf32>, vector<8x4x3xf32>, vector<8x4x3xf32>, vector<8x4x3xf32>, vector<8x4x3xf32>, vector<8x4x3xf32>, vector<8x4x3xf32>, vector<8x4x3xf32> -> vector<8x4x24xf32>
    %12 = vector.extract_strided_slice %11 {offsets = [0, 0, 0], sizes = [8, 1, 24], strides = [1, 1, 1]} : vector<8x4x24xf32> to vector<8x1x24xf32>
    %13 = vector.shape_cast %12 : vector<8x1x24xf32> to vector<8x1x24xf32>
    %14 = vector.broadcast %13 : vector<8x1x24xf32> to vector<8x16x24xf32>
    %15 = vector.extract_strided_slice %11 {offsets = [0, 1, 0], sizes = [8, 1, 24], strides = [1, 1, 1]} : vector<8x4x24xf32> to vector<8x1x24xf32>
    %16 = vector.shape_cast %15 : vector<8x1x24xf32> to vector<8x1x24xf32>
    %17 = vector.broadcast %16 : vector<8x1x24xf32> to vector<8x16x24xf32>
    %18 = vector.extract_strided_slice %11 {offsets = [0, 2, 0], sizes = [8, 1, 24], strides = [1, 1, 1]} : vector<8x4x24xf32> to vector<8x1x24xf32>
    %19 = vector.shape_cast %18 : vector<8x1x24xf32> to vector<8x1x24xf32>
    %20 = vector.broadcast %19 : vector<8x1x24xf32> to vector<8x16x24xf32>
    %21 = vector.extract_strided_slice %11 {offsets = [0, 3, 0], sizes = [8, 1, 24], strides = [1, 1, 1]} : vector<8x4x24xf32> to vector<8x1x24xf32>
    %22 = vector.shape_cast %21 : vector<8x1x24xf32> to vector<8x1x24xf32>
    %23 = vector.broadcast %22 : vector<8x1x24xf32> to vector<8x16x24xf32>
    %24 = tpu.concatenate %14, %17, %20, %23 in 1 : vector<8x16x24xf32>, vector<8x16x24xf32>, vector<8x16x24xf32>, vector<8x16x24xf32> -> vector<8x64x24xf32>
    %25 = vector.extract_strided_slice %11 {offsets = [0, 0, 0], sizes = [8, 1, 24], strides = [1, 1, 1]} : vector<8x4x24xf32> to vector<8x1x24xf32>
    %26 = vector.shape_cast %25 : vector<8x1x24xf32> to vector<8x1x24xf32>
    %27 = vector.broadcast %26 : vector<8x1x24xf32> to vector<8x4x24xf32>
    %28 = vector.extract_strided_slice %11 {offsets = [0, 1, 0], sizes = [8, 1, 24], strides = [1, 1, 1]} : vector<8x4x24xf32> to vector<8x1x24xf32>
    %29 = vector.shape_cast %28 : vector<8x1x24xf32> to vector<8x1x24xf32>
    %30 = vector.broadcast %29 : vector<8x1x24xf32> to vector<8x4x24xf32>
    %31 = vector.extract_strided_slice %11 {offsets = [0, 2, 0], sizes = [8, 1, 24], strides = [1, 1, 1]} : vector<8x4x24xf32> to vector<8x1x24xf32>
    %32 = vector.shape_cast %31 : vector<8x1x24xf32> to vector<8x1x24xf32>
    %33 = vector.broadcast %32 : vector<8x1x24xf32> to vector<8x4x24xf32>
    %34 = vector.extract_strided_slice %11 {offsets = [0, 3, 0], sizes = [8, 1, 24], strides = [1, 1, 1]} : vector<8x4x24xf32> to vector<8x1x24xf32>
    %35 = vector.shape_cast %34 : vector<8x1x24xf32> to vector<8x1x24xf32>
    %36 = vector.broadcast %35 : vector<8x1x24xf32> to vector<8x4x24xf32>
    %37 = tpu.concatenate %27, %30, %33, %36 in 1 : vector<8x4x24xf32>, vector<8x4x24xf32>, vector<8x4x24xf32>, vector<8x4x24xf32> -> vector<8x16x24xf32>
    %38 = tpu.concatenate %37, %37, %37, %37 in 1 : vector<8x16x24xf32>, vector<8x16x24xf32>, vector<8x16x24xf32>, vector<8x16x24xf32> -> vector<8x64x24xf32>
    %39 = tpu.concatenate %11, %11, %11, %11, %11, %11, %11, %11, %11, %11, %11, %11, %11, %11, %11, %11 in 1 : vector<8x4x24xf32>, vector<8x4x24xf32>, vector<8x4x24xf32>, vector<8x4x24xf32>, vector<8x4x24xf32>, vector<8x4x24xf32>, vector<8x4x24xf32>, vector<8x4x24xf32>, vector<8x4x24xf32>, vector<8x4x24xf32>, vector<8x4x24xf32>, vector<8x4x24xf32>, vector<8x4x24xf32>, vector<8x4x24xf32>, vector<8x4x24xf32>, vector<8x4x24xf32> -> vector<8x64x24xf32>
    %40 = tpu.iota {dimensions = array<i32: 2>} : vector<1x1x3xi32>
    %41 = tpu.concatenate %40, %40, %40, %40, %40, %40, %40, %40 in 2 : vector<1x1x3xi32>, vector<1x1x3xi32>, vector<1x1x3xi32>, vector<1x1x3xi32>, vector<1x1x3xi32>, vector<1x1x3xi32>, vector<1x1x3xi32>, vector<1x1x3xi32> -> vector<1x1x24xi32>
    %c0_i32 = arith.constant 0 : i32
    %42 = vector.broadcast %c0_i32 : i32 to vector<1x1x24xi32>
    %43 = arith.cmpi eq, %41, %42 : vector<1x1x24xi32>
    %c1_i32 = arith.constant 1 : i32
    %44 = vector.broadcast %c1_i32 : i32 to vector<1x1x24xi32>
    %45 = arith.cmpi eq, %41, %44 : vector<1x1x24xi32>
    %46 = vector.shape_cast %45 : vector<1x1x24xi1> to vector<1x1x24xi1>
    %47 = vector.broadcast %46 : vector<1x1x24xi1> to vector<8x64x24xi1>
    %48 = arith.select %47, %24, %39 : vector<8x64x24xi1>, vector<8x64x24xf32>
    %49 = vector.shape_cast %43 : vector<1x1x24xi1> to vector<1x1x24xi1>
    %50 = vector.broadcast %49 : vector<1x1x24xi1> to vector<8x64x24xi1>
    %51 = arith.select %50, %38, %48 : vector<8x64x24xi1>, vector<8x64x24xf32>
    %c0_2 = arith.constant 0 : index
    %c0_3 = arith.constant 0 : index
    %c0_4 = arith.constant 0 : index
    %52 = vector.load %arg2[%c0_2, %c0_3, %c0_4] : memref<8x64x24xf32, #tpu.memory_space<vmem>>, vector<8x64x24xf32>
    tpu.vector_store %arg2[%c0_2, %c0_3, %c0_4], %51 {strides = array<i32>} : memref<8x64x24xf32, #tpu.memory_space<vmem>>, vector<8x64x24xf32>,
    return
  }
  func.func @transform_0(%arg0: i32) -> (i32, i32, i32) {
    %c0_i32 = arith.constant 0 : i32
    %c0_i32_0 = arith.constant 0 : i32
    %c0_i32_1 = arith.constant 0 : i32
    return %arg0, %c0_i32, %c0_i32_0 : i32, i32, i32
  }
  func.func @transform_1(%arg0: i32) -> (i32, i32, i32) {
    %c0_i32 = arith.constant 0 : i32
    %c0_i32_0 = arith.constant 0 : i32
    %c0_i32_1 = arith.constant 0 : i32
    return %arg0, %c0_i32, %c0_i32_0 : i32, i32, i32
  }
}

</mosaic_0001>

<bundles_post_ra>
// kernel: tpu_custom_call.1
= control target key start
LH: loop header
LB: loop body
LE: loop exit
PB: predicated region body
PF: predicated region fallthrough
CT: control target
= control target key end

     0   :  { %6 = vsyncpa [#allocation3], 0  ;;  %s640_s9 = smov [#allocation2]   ;;  %s641_s11 = smov 64   ;;  %s1388_s0 = inlined_call_operand.hbm [shape: f32[8,4,8], index: 0, kind: input, shape index: {}]   ;;  %s1389_s1 = inlined_call_operand.vmem [shape: f32[8,64,24], index: 1, kind: output, shape index: {}]  }
   0x1   :  { %s11_s8 = sshll.u32 %s1388_s0, 4  ;;  %s13_s10 = sshll.u32 %s640_s9, 4  ;;  %s12_s8 = int_to_ptr.hbm [resolvable:$true] %s11_s8  ;;  %s14_s10 = int_to_ptr.vmem [resolvable:$true] %s13_s10 }
   0x2   :  { %s642_s12 = smov 4  }
   0x3   :  { %19 = dma.hbm_to_vmem [thread:$0]  %s12_s8, 512, %s14_s10, [#allocation3], %s641_s11, %s641_s11, %s642_s12  }
   0x4   :  { %638 = dma.done.wait [#allocation3], 512  }
   0x5   :  { %639 = vsyncadd [#allocation3], 4294966784  ;;  %v26_v0 = vld [vmem:[#allocation2 + $0x8] sm:$0xf]  ;;  %v24_v1 = vld [vmem:[#allocation2] sm:$0xf]  ;;  %v401_v35 = vlaneseq }
   0x6   :  { %s643_s13 = smov 1   ;;  %v28_v2 = vld [vmem:[#allocation2 + $0x10] sm:$0xf]  ;;  %v27_v3 = vld [vmem:[#allocation2 + $0xc] sm:$0xf]  ;;  %vm64_vm0 = vcmask 7168  }
   0x7   :  { %44 = vrot.lane.b32.xlu1 %v26_v0, %s643_s13  ;;  %40 = vrot.lane.b32.xlu0 %v24_v1, %s643_s13  ;;  %v25_v4 = vld [vmem:[#allocation2 + $0x4] sm:$0xf]  ;;  %v29_v5 = vld [vmem:[#allocation2 + $0x14] sm:$0xf]  ;;  %v30_v6 = vld [vmem:[#allocation2 + $0x18] sm:$0xf] }
   0x8   :  { %48 = vrot.lane.b32.xlu2 %v28_v2, %s643_s13  ;;  %v31_v7 = vld [vmem:[#allocation2 + $0x1c] sm:$0xf]  ;;  %vm73_vm1 = vcmask 72704   ;;  %s644_s0 = smov 2   ;;  %s645_s14 = smov 6   ;;  %v766_v38 = vand.u32 127, %v401_v35 }
   0x9   :  { %s646_s15 = smov 8   ;;  %s647_s16 = smov 10   ;;  %vm267_vm2 = vcmask 48128   ;;  %vm258_vm3 = vcmask 23552   ;;  %vm284_vm4 = vcmask 97280   ;;  %vm293_vm5 = vcmask 121856  }
   0xa   :  { %s648_s17 = smov 12   ;;  %s649_s18 = smov 15   ;;  %vm302_vm6 = vcmask 146432   ;;  %vm311_vm7 = vcmask 171008   ;;  %vm352_vm10 = vcmask 1043456   ;;  %vm528_vm13 = vcmask 195584  }
   0xb   :  { %s650_s19 = smov 9   ;;  %s651_s20 = smov 3  }
   0xc   :  { %s652_s21 = smov 18   ;;  %s653_s22 = smov 14  }
   0xd   :  { %s654_s23 = smov 21  }
   0xf   :  { %46 = vrot.lane.b32.xlu1 %v27_v3, %s643_s13  ;;  %42 = vrot.lane.b32.xlu0 %v25_v4, %s643_s13 }
  0x10   :  { %50 = vrot.lane.b32.xlu2 %v29_v5, %s643_s13 }
  0x17   :  { %52 = vrot.lane.b32.xlu0 %v30_v6, %s643_s13  ;;  %54 = vrot.lane.b32.xlu1 %v31_v7, %s643_s13 }
  0x62   :  { %v49_v8 = vpop.permute.xlu2 %48 }
  0x63   :  { %v69_v24 = vsel %vm64_vm0, 0.0, %v49_v8 }
  0x64   :  { %v701_v28 = vsel %vm73_vm1, %v69_v24, 0.0 }
  0x6a   :  { %v51_v15 = vpop.permute.xlu2 %50 }
  0x6b   :  { %v70_v16 = vsel %vm64_vm0, 0.0, %v51_v15 }
  0x6c   :  { %v682_v17 = vsel %vm73_vm1, %v70_v16, 0.0 }
  0x79   :  { %v45_v9 = vpop.permute.xlu1 %44  ;;  %v41_v10 = vpop.permute.xlu0 %40 }
  0x7a   :  { %v67_v11 = vsel %vm64_vm0, 0.0, %v45_v9  ;;  %v65_v12 = vsel %vm64_vm0, 0.0, %v41_v10 }
  0x7b   :  { %v673_v13 = vsel %vm73_vm1, %v67_v11, 0.0  ;;  %v676_v14 = vsel %vm73_vm1, %v65_v12, 0.0 }
  0x7c   :  { %94 = vrot.lane.b32.xlu1 %v673_v13, %s644_s0  ;;  %90 = vrot.lane.b32.xlu2 %v676_v14, %s644_s0 }
  0x81   :  { %v47_v18 = vpop.permute.xlu1 %46  ;;  %v43_v19 = vpop.permute.xlu0 %42 }
  0x82   :  { %v68_v20 = vsel %vm64_vm0, 0.0, %v47_v18  ;;  %v66_v21 = vsel %vm64_vm0, 0.0, %v43_v19 }
  0x83   :  { %v687_v22 = vsel %vm73_vm1, %v68_v20, 0.0  ;;  %v690_v23 = vsel %vm73_vm1, %v66_v21, 0.0 }
  0x84   :  { %100 = vrot.lane.b32.xlu1 %v682_v17, %s644_s0  ;;  %96 = vrot.lane.b32.xlu2 %v687_v22, %s644_s0 }
  0x85   :  { %92 = vrot.lane.b32.xlu0 %v690_v23, %s644_s0 }
  0x89   :  { %v53_v25 = vpop.permute.xlu0 %52  ;;  %v55_v29 = vpop.permute.xlu1 %54 }
  0x8a   :  { %v71_v26 = vsel %vm64_vm0, 0.0, %v53_v25  ;;  %v72_v30 = vsel %vm64_vm0, 0.0, %v55_v29 }
  0x8b   :  { %v698_v27 = vsel %vm73_vm1, %v71_v26, 0.0  ;;  %v709_v31 = vsel %vm73_vm1, %v72_v30, 0.0 }
  0x8c   :  { %114 = vrot.lane.b32.xlu1 %v676_v14, %s642_s12  ;;  %102 = vrot.lane.b32.xlu2 %v698_v27, %s644_s0 }
  0x8d   :  { %98 = vrot.lane.b32.xlu0 %v701_v28, %s644_s0 }
  0x94   :  { %120 = vrot.lane.b32.xlu1 %v687_v22, %s642_s12  ;;  %116 = vrot.lane.b32.xlu2 %v690_v23, %s642_s12 }
  0x95   :  { %104 = vrot.lane.b32.xlu0 %v709_v31, %s644_s0 }
  0x9c   :  { %126 = vrot.lane.b32.xlu1 %v698_v27, %s642_s12  ;;  %122 = vrot.lane.b32.xlu2 %v701_v28, %s642_s12 }
  0x9d   :  { %118 = vrot.lane.b32.xlu0 %v673_v13, %s642_s12 }
  0xa4   :  { %140 = vrot.lane.b32.xlu1 %v690_v23, %s645_s14  ;;  %128 = vrot.lane.b32.xlu2 %v709_v31, %s642_s12 }
  0xa5   :  { %124 = vrot.lane.b32.xlu0 %v682_v17, %s642_s12 }
  0xac   :  { %146 = vrot.lane.b32.xlu1 %v701_v28, %s645_s14  ;;  %142 = vrot.lane.b32.xlu2 %v673_v13, %s645_s14 }
  0xad   :  { %138 = vrot.lane.b32.xlu0 %v676_v14, %s645_s14 }
  0xb4   :  { %152 = vrot.lane.b32.xlu1 %v709_v31, %s645_s14  ;;  %148 = vrot.lane.b32.xlu2 %v682_v17, %s645_s14 }
  0xb5   :  { %144 = vrot.lane.b32.xlu0 %v687_v22, %s645_s14 }
  0xbc   :  { %166 = vrot.lane.b32.xlu1 %v673_v13, %s646_s15  ;;  %162 = vrot.lane.b32.xlu2 %v676_v14, %s646_s15 }
  0xbd   :  { %150 = vrot.lane.b32.xlu0 %v698_v27, %s645_s14 }
  0xc4   :  { %172 = vrot.lane.b32.xlu1 %v682_v17, %s646_s15  ;;  %168 = vrot.lane.b32.xlu2 %v687_v22, %s646_s15 }
  0xc5   :  { %164 = vrot.lane.b32.xlu0 %v690_v23, %s646_s15 }
  0xcc   :  { %186 = vrot.lane.b32.xlu1 %v676_v14, %s647_s16  ;;  %174 = vrot.lane.b32.xlu2 %v698_v27, %s646_s15 }
  0xcd   :  { %170 = vrot.lane.b32.xlu0 %v701_v28, %s646_s15 }
  0xd4   :  { %192 = vrot.lane.b32.xlu1 %v687_v22, %s647_s16  ;;  %188 = vrot.lane.b32.xlu2 %v690_v23, %s647_s16 }
  0xd5   :  { %176 = vrot.lane.b32.xlu0 %v709_v31, %s646_s15 }
  0xd6   :  { %v91_v32 = vpop.permute.xlu2 %90 }
  0xd7   :  { %v259_v44 = vsel %vm258_vm3, %v676_v14, %v91_v32 }
  0xdc   :  { %198 = vrot.lane.b32.xlu1 %v698_v27, %s647_s16  ;;  %194 = vrot.lane.b32.xlu2 %v701_v28, %s647_s16 }
  0xdd   :  { %190 = vrot.lane.b32.xlu0 %v673_v13, %s647_s16 }
  0xde   :  { %v97_v33 = vpop.permute.xlu2 %96 }
  0xdf   :  { %v262_v51 = vsel %vm258_vm3, %v687_v22, %v97_v33 }
  0xe4   :  { %212 = vrot.lane.b32.xlu1 %v690_v23, %s648_s17  ;;  %200 = vrot.lane.b32.xlu2 %v709_v31, %s647_s16 }
  0xe5   :  { %196 = vrot.lane.b32.xlu0 %v682_v17, %s647_s16 }
  0xe6   :  { %v103_v34 = vpop.permute.xlu2 %102 }
  0xe7   :  { %v265_v58 = vsel %vm258_vm3, %v698_v27, %v103_v34 }
  0xec   :  { %218 = vrot.lane.b32.xlu1 %v701_v28, %s648_s17  ;;  %214 = vrot.lane.b32.xlu2 %v673_v13, %s648_s17 }
  0xed   :  { %210 = vrot.lane.b32.xlu0 %v676_v14, %s648_s17 }
  0xee   :  { %v95_v36 = vpop.permute.xlu1 %94  ;;  %v117_v37 = vpop.permute.xlu2 %116 }
  0xef   :  { %v261_v61 = vsel %vm258_vm3, %v673_v13, %v95_v36 }
  0xf4   :  { %405 = vrot.lane.b32.xlu1 %v766_v38, %s645_s14  ;;  %220 = vrot.lane.b32.xlu2 %v682_v17, %s648_s17 }
  0xf5   :  { %216 = vrot.lane.b32.xlu0 %v687_v22, %s648_s17 }
  0xf6   :  { %v101_v39 = vpop.permute.xlu1 %100  ;;  %v123_v40 = vpop.permute.xlu2 %122 }
  0xf7   :  { %v93_v41 = vpop.permute.xlu0 %92  ;;  %v264_v4 = vsel %vm258_vm3, %v682_v17, %v101_v39 }
  0xf8   :  { %v260_v42 = vsel %vm258_vm3, %v690_v23, %v93_v41 }
  0xf9   :  { %v269_v43 = vsel %vm267_vm2, %v260_v42, %v117_v37 }
  0xfc   :  { %411 = vrot.lane.b32.xlu1 %v766_v38, %s649_s18  ;;  %407 = vrot.lane.b32.xlu2 %v766_v38, %s650_s19 }
  0xfd   :  { %403 = vrot.lane.b32.xlu0 %v766_v38, %s651_s20 }
  0xfe   :  { %v115_v45 = vpop.permute.xlu1 %114  ;;  %v129_v46 = vpop.permute.xlu2 %128 }
  0xff   :  { %v268_v47 = vsel %vm267_vm2, %v259_v44, %v115_v45  ;;  %v99_v48 = vpop.permute.xlu0 %98 }
 0x100   :  { %v263_v49 = vsel %vm258_vm3, %v701_v28, %v99_v48 }
 0x101   :  { %v272_v50 = vsel %vm267_vm2, %v263_v49, %v123_v40 }
 0x104   :  { %222 = vrot.lane.b32.xlu1 %v698_v27, %s648_s17  ;;  %413 = vrot.lane.b32.xlu2 %v766_v38, %s652_s21 }
 0x105   :  { %409 = vrot.lane.b32.xlu0 %v766_v38, %s648_s17 }
 0x106   :  { %v121_v52 = vpop.permute.xlu1 %120  ;;  %v143_v53 = vpop.permute.xlu2 %142 }
 0x107   :  { %v271_v54 = vsel %vm267_vm2, %v262_v51, %v121_v52  ;;  %v105_v55 = vpop.permute.xlu0 %104 }
 0x108   :  { %v266_v56 = vsel %vm258_vm3, %v709_v31, %v105_v55 }
 0x109   :  { %v275_v57 = vsel %vm267_vm2, %v266_v56, %v129_v46 }
 0x10c   :  { %236 = vrot.lane.b32.xlu1 %v690_v23, %s653_s22  ;;  %224 = vrot.lane.b32.xlu2 %v709_v31, %s648_s17 }
 0x10d   :  { %415 = vrot.lane.b32.xlu0 %v766_v38, %s654_s23 }
 0x10e   :  { %v127_v59 = vpop.permute.xlu1 %126  ;;  %v149_v60 = vpop.permute.xlu2 %148 }
 0x10f   :  { %v274_v62 = vsel %vm267_vm2, %v265_v58, %v127_v59  ;;  %v119_v63 = vpop.permute.xlu0 %118 }
 0x110   :  { %v270_v0 = vsel %vm267_vm2, %v261_v61, %v119_v63 }
 0x111   :  { %v278_v1 = vsel %vm73_vm1, %v270_v0, %v143_v53 }
 0x114   :  { %242 = vrot.lane.b32.xlu1 %v701_v28, %s653_s22  ;;  %238 = vrot.lane.b32.xlu2 %v673_v13, %s653_s22 }
 0x115   :  { %234 = vrot.lane.b32.xlu0 %v676_v14, %s653_s22 }
 0x116   :  { %v141_v2 = vpop.permute.xlu1 %140  ;;  %v163_v3 = vpop.permute.xlu2 %162 }
 0x117   :  { %v277_v5 = vsel %vm73_vm1, %v269_v43, %v141_v2  ;;  %v125_v6 = vpop.permute.xlu0 %124 }
 0x118   :  { %v273_v7 = vsel %vm267_vm2, %v264_v4, %v125_v6 }
 0x119   :  { %v281_v8 = vsel %vm73_vm1, %v273_v7, %v149_v60 }
 0x11c   :  { %248 = vrot.lane.b32.xlu1 %v709_v31, %s653_s22  ;;  %244 = vrot.lane.b32.xlu2 %v682_v17, %s653_s22 }
 0x11d   :  { %240 = vrot.lane.b32.xlu0 %v687_v22, %s653_s22 }
 0x11e   :  { %v147_v9 = vpop.permute.xlu1 %146  ;;  %v169_v10 = vpop.permute.xlu2 %168 }
 0x11f   :  { %v280_v11 = vsel %vm73_vm1, %v272_v50, %v147_v9  ;;  %v139_v12 = vpop.permute.xlu0 %138 }
 0x120   :  { %v276_v13 = vsel %vm73_vm1, %v268_v47, %v139_v12 }
 0x121   :  { %v285_v14 = vsel %vm284_vm4, %v276_v13, %v163_v3 }
 0x125   :  { %246 = vrot.lane.b32.xlu0 %v698_v27, %s653_s22 }
 0x126   :  { %v153_v15 = vpop.permute.xlu1 %152  ;;  %v175_v16 = vpop.permute.xlu2 %174 }
 0x127   :  { %v283_v17 = vsel %vm73_vm1, %v275_v57, %v153_v15  ;;  %v145_v18 = vpop.permute.xlu0 %144  ;;  %v655_v15 = vmov 0  }
 0x128   :  { %v279_v19 = vsel %vm73_vm1, %v271_v54, %v145_v18 }
 0x129   :  { %v288_v20 = vsel %vm284_vm4, %v279_v19, %v169_v10 }
 0x12e   :  { %v167_v21 = vpop.permute.xlu1 %166  ;;  %v189_v24 = vpop.permute.xlu2 %188 }
 0x12f   :  { %v287_v22 = vsel %vm284_vm4, %v278_v1, %v167_v21  ;;  %v151_v23 = vpop.permute.xlu0 %150 }
 0x130   :  { %v282_v25 = vsel %vm73_vm1, %v274_v62, %v151_v23 }
 0x131   :  { %v291_v26 = vsel %vm284_vm4, %v282_v25, %v175_v16 }
 0x136   :  { %v173_v28 = vpop.permute.xlu1 %172  ;;  %v195_v31 = vpop.permute.xlu2 %194 }
 0x137   :  { %v838_v27 = vsel %vm284_vm4, %v281_v8, %v173_v28  ;;  %v165_v29 = vpop.permute.xlu0 %164 }
 0x138   :  { %v286_v30 = vsel %vm284_vm4, %v277_v5, %v165_v29 }
 0x139   :  { %v295_v4 = vsel %vm293_vm5, %v286_v30, %v189_v24 }
 0x13e   :  { %v187_v32 = vpop.permute.xlu1 %186  ;;  %v201_v37 = vpop.permute.xlu2 %200 }
 0x13f   :  { %v294_v33 = vsel %vm293_vm5, %v285_v14, %v187_v32  ;;  %v171_v34 = vpop.permute.xlu0 %170 }
 0x140   :  { %v289_v35 = vsel %vm284_vm4, %v280_v11, %v171_v34 }
 0x141   :  { %v844_v36 = vsel %vm293_vm5, %v289_v35, %v195_v31 }
 0x146   :  { %v193_v39 = vpop.permute.xlu1 %192  ;;  %v215_v44 = vpop.permute.xlu2 %214 }
 0x147   :  { %v297_v40 = vsel %vm293_vm5, %v288_v20, %v193_v39  ;;  %v177_v41 = vpop.permute.xlu0 %176 }
 0x148   :  { %v292_v42 = vsel %vm284_vm4, %v283_v17, %v177_v41 }
 0x149   :  { %v849_v43 = vsel %vm293_vm5, %v292_v42, %v201_v37 }
 0x14e   :  { %v199_v45 = vpop.permute.xlu1 %198  ;;  %v221_v50 = vpop.permute.xlu2 %220 }
 0x14f   :  { %v852_v46 = vsel %vm293_vm5, %v291_v26, %v199_v45  ;;  %v191_v47 = vpop.permute.xlu0 %190 }
 0x150   :  { %v296_v9 = vsel %vm293_vm5, %v287_v22, %v191_v47 }
 0x151   :  { %v305_v14 = vsel %vm302_vm6, %v296_v9, %v215_v44 }
 0x156   :  { %v213_v48 = vpop.permute.xlu1 %212  ;;  %v408_v54 = vpop.permute.xlu2 %407 }
 0x157   :  { %v197_v49 = vpop.permute.xlu0 %196  ;;  %v304_v6 = vsel %vm302_vm6, %v295_v4, %v213_v48 }
 0x158   :  { %v299_v28 = vsel %vm293_vm5, %v838_v27, %v197_v49 }
 0x159   :  { %v308_v37 = vsel %vm302_vm6, %v299_v28, %v221_v50 }
 0x15e   :  { %v854_v51 = vpop.permute.xlu1 %218  ;;  %v414_v58 = vpop.permute.xlu2 %413 }
 0x15f   :  { %v211_v52 = vpop.permute.xlu0 %210 }
 0x160   :  { %v857_v53 = vsel %vm302_vm6, %v294_v33, %v211_v52 }
 0x166   :  { %v406_v55 = vpop.permute.xlu1 %405  ;;  %v864_v62 = vpop.permute.xlu2 %224 }
 0x167   :  { %v217_v56 = vpop.permute.xlu0 %216 }
 0x168   :  { %v860_v57 = vsel %vm302_vm6, %v297_v40, %v217_v56 }
 0x16e   :  { %v412_v59 = vpop.permute.xlu1 %411  ;;  %v239_v10 = vpop.permute.xlu2 %238 }
 0x16f   :  { %v404_v60 = vpop.permute.xlu0 %403  ;;  %v314_v18 = vsel %vm311_vm7, %v305_v14, %v239_v10 }
 0x170   :  { %v417_v61 = vsel %vm258_vm3, %v766_v38, %v404_v60  ;;  %v379_v32 = vrot.slane %v314_v18, 4  ;;  %v322_v42 = vperm.slane %v314_v18, 0  ;;  %v330_v44 = vperm.slane %v314_v18, 1 }
 0x171   :  { %v418_v63 = vsel %vm267_vm2, %v417_v61, %v406_v55  ;;  %v338_v48 = vperm.slane %v314_v18, 2  ;;  %v346_v49 = vperm.slane %v314_v18, 3 }
 0x172   :  { %v419_v2 = vsel %vm73_vm1, %v418_v63, %v408_v54  ;;  %v395_v50 = vsel %vm352_vm10, %v314_v18, %v379_v32 }
 0x173   :  { %v363_v63 = vsel %vm352_vm10, %v338_v48, %v346_v49 }
 0x176   :  { %v867_v0 = vpop.permute.xlu1 %222  ;;  %v245_v27 = vpop.permute.xlu2 %244 }
 0x177   :  { %v410_v1 = vpop.permute.xlu0 %409  ;;  %v317_v54 = vsel %vm311_vm7, %v308_v37, %v245_v27 }
 0x178   :  { %v420_v3 = vsel %vm284_vm4, %v419_v2, %v410_v1  ;;  %v382_v1 = vrot.slane %v317_v54, 4 }
 0x179   :  { %v421_v5 = vsel %vm293_vm5, %v420_v3, %v412_v59  ;;  %v355_v59 = vsel %vm352_vm10, %v322_v42, %v330_v44 }
 0x17a   :  { %v422_v11 = vsel %vm302_vm6, %v421_v5, %v414_v58 }
 0x17e   :  { %v237_v7 = vpop.permute.xlu1 %236 }
 0x17f   :  { %v313_v38 = vsel %vm311_vm7, %v304_v6, %v237_v7  ;;  %v416_v8 = vpop.permute.xlu0 %415  ;;  %v307_v6 = vsel %vm302_vm6, %v844_v36, %v854_v51  ;;  %v325_v7 = vperm.slane %v317_v54, 0  ;;  %v341_v51 = vperm.slane %v317_v54, 2 }
 0x180   :  { %v423_v12 = vsel %vm311_vm7, %v422_v11, %v416_v8  ;;  %v378_v13 = vrot.slane %v313_v38, 4  ;;  %v321_v21 = vperm.slane %v313_v38, 0  ;;  %v329_v22 = vperm.slane %v313_v38, 1 }
 0x181   :  { %vm424_vm8 = vcmp.eq.s32.totalorder %v423_v12, 0  ;;  %vm425_vm9 = vcmp.eq.s32.totalorder %v423_v12, 1  ;;  %v337_v23 = vperm.slane %v313_v38, 2  ;;  %v345_v24 = vperm.slane %v313_v38, 3 }
 0x182   :  { %v426_v16 = vsel %vm425_vm9, 1, %v655_v15  ;;  %v461_v17 = vsel %vm424_vm8, 1, %v655_v15  ;;  %v394_v25 = vsel %vm352_vm10, %v313_v38, %v378_v13  ;;  %v354_v33 = vsel %vm352_vm10, %v321_v21, %v329_v22 }
 0x183   :  { %v427_v19 = vperm.slane %v426_v16, 0  ;;  %v462_v20 = vperm.slane %v461_v17, 0  ;;  %v362_v34 = vsel %vm352_vm10, %v337_v23, %v345_v24  ;;  %v333_v8 = vperm.slane %v317_v54, 1 }
 0x184   :  { %v349_v11 = vperm.slane %v317_v54, 3  ;;  %v398_v12 = vsel %vm352_vm10, %v317_v54, %v382_v1 }
 0x185   :  { %vm881_vm11 = vcmp.eq.s32.totalorder %v427_v19, 1  ;;  %vm891_vm12 = vcmp.eq.s32.totalorder %v462_v20, 1  ;;  %v358_v18 = vsel %vm352_vm10, %v325_v7, %v333_v8 }
 0x186   :  { %v433_v29 = vsel %vm881_vm11, %v321_v21, %v394_v25  ;;  %v434_v30 = vsel %vm881_vm11, %v329_v22, %v394_v25  ;;  %v435_v35 = vsel %vm881_vm11, %v337_v23, %v394_v25  ;;  %v436_v45 = vsel %vm881_vm11, %v345_v24, %v394_v25  ;;  %v243_v3 = vpop.permute.xlu1 %242 }
 0x187   :  { %v472_v39 = vsel %vm891_vm12, %v354_v33, %v433_v29  ;;  %v473_v40 = vsel %vm891_vm12, %v362_v34, %v433_v29  ;;  %v474_v41 = vsel %vm891_vm12, %v354_v33, %v434_v30  ;;  %v475_v47 = vsel %vm891_vm12, %v362_v34, %v434_v30  ;;  %v235_v23 = vpop.permute.xlu0 %234 }
 0x188   :  { %537 = vst.msk [vmem:[%s1389_s1 + $0x40] sm:$0xff] %vm528_vm13, %v472_v39  ;;  %v476_v52 = vsel %vm891_vm12, %v354_v33, %v435_v35  ;;  %v437_v55 = vsel %vm881_vm11, %v322_v42, %v395_v50  ;;  %v477_v56 = vsel %vm891_vm12, %v362_v34, %v435_v35  ;;  %v478_v58 = vsel %vm891_vm12, %v354_v33, %v436_v45 }
 0x189   :  { %538 = vst.msk [vmem:[%s1389_s1 + $0x48] sm:$0xff] %vm528_vm13, %v473_v40  ;;  %v438_v60 = vsel %vm881_vm11, %v330_v44, %v395_v50  ;;  %v479_v61 = vsel %vm891_vm12, %v362_v34, %v436_v45  ;;  %v480_v2 = vsel %vm891_vm12, %v355_v59, %v437_v55  ;;  %v439_v4 = vsel %vm881_vm11, %v338_v48, %v395_v50 }
 0x18a   :  { %539 = vst.msk [vmem:[%s1389_s1 + $0x50] sm:$0xff] %vm528_vm13, %v474_v41  ;;  %v481_v5 = vsel %vm891_vm12, %v363_v63, %v437_v55  ;;  %v482_v38 = vsel %vm891_vm12, %v355_v59, %v438_v60  ;;  %v440_v9 = vsel %vm881_vm11, %v346_v49, %v395_v50  ;;  %v483_v10 = vsel %vm891_vm12, %v363_v63, %v438_v60 }
 0x18b   :  { %540 = vst.msk [vmem:[%s1389_s1 + $0x58] sm:$0xff] %vm528_vm13, %v475_v47  ;;  %v978_v36 = vsel %vm311_vm7, %v307_v6, %v243_v3  ;;  %v484_v13 = vsel %vm891_vm12, %v355_v59, %v439_v4  ;;  %v449_v14 = vsel %vm881_vm11, %v325_v7, %v398_v12  ;;  %v485_v15 = vsel %vm891_vm12, %v363_v63, %v439_v4 }
 0x18c   :  { %541 = vst.msk [vmem:[%s1389_s1 + $0x60] sm:$0xff] %vm528_vm13, %v476_v52  ;;  %v486_v16 = vsel %vm891_vm12, %v355_v59, %v440_v9  ;;  %v381_v17 = vrot.slane %v978_v36, 4  ;;  %v450_v19 = vsel %vm881_vm11, %v333_v8, %v398_v12  ;;  %v487_v20 = vsel %vm891_vm12, %v363_v63, %v440_v9 }
 0x18d   :  { %542 = vst.msk [vmem:[%s1389_s1 + $0x68] sm:$0xff] %vm528_vm13, %v477_v56  ;;  %v366_v21 = vsel %vm352_vm10, %v341_v51, %v349_v11  ;;  %v504_v22 = vsel %vm891_vm12, %v358_v18, %v449_v14  ;;  %v451_v24 = vsel %vm881_vm11, %v341_v51, %v398_v12  ;;  %v324_v28 = vperm.slane %v978_v36, 0 }
 0x18e   :  { %543 = vst.msk [vmem:[%s1389_s1 + $0x70] sm:$0xff] %vm528_vm13, %v478_v58  ;;  %v505_v25 = vsel %vm891_vm12, %v366_v21, %v449_v14  ;;  %v332_v29 = vperm.slane %v978_v36, 1  ;;  %v506_v30 = vsel %vm891_vm12, %v358_v18, %v450_v19  ;;  %v340_v32 = vperm.slane %v978_v36, 2  ;;  %v249_v52 = vpop.permute.xlu1 %248 }
 0x18f   :  { %544 = vst.msk [vmem:[%s1389_s1 + $0x78] sm:$0xff] %vm528_vm13, %v479_v61  ;;  %v348_v33 = vperm.slane %v978_v36, 3  ;;  %v397_v34 = vsel %vm352_vm10, %v978_v36, %v381_v17  ;;  %v452_v35 = vsel %vm881_vm11, %v349_v11, %v398_v12  ;;  %v507_v27 = vsel %vm891_vm12, %v366_v21, %v450_v19  ;;  %v241_v8 = vpop.permute.xlu0 %240 }
 0x190   :  { %545 = vst.msk [vmem:[%s1389_s1 + $0x80] sm:$0xff] %vm528_vm13, %v480_v2  ;;  %v312_v37 = vsel %vm311_vm7, %v857_v53, %v235_v23  ;;  %v508_v39 = vsel %vm891_vm12, %v358_v18, %v451_v24  ;;  %v509_v40 = vsel %vm891_vm12, %v366_v21, %v451_v24  ;;  %v357_v41 = vsel %vm352_vm10, %v324_v28, %v332_v29 }
 0x191   :  { %546 = vst.msk [vmem:[%s1389_s1 + $0x88] sm:$0xff] %vm528_vm13, %v481_v5  ;;  %v445_v53 = vsel %vm881_vm11, %v324_v28, %v397_v34  ;;  %v510_v42 = vsel %vm891_vm12, %v358_v18, %v452_v35  ;;  %v365_v44 = vsel %vm352_vm10, %v340_v32, %v348_v33  ;;  %v377_v45 = vrot.slane %v312_v37, 4 }
 0x192   :  { %547 = vst.msk [vmem:[%s1389_s1 + $0x90] sm:$0xff] %vm528_vm13, %v482_v38  ;;  %v511_v47 = vsel %vm891_vm12, %v366_v21, %v452_v35  ;;  %v446_v48 = vsel %vm881_vm11, %v332_v29, %v397_v34  ;;  %v310_v49 = vsel %vm302_vm6, %v849_v43, %v864_v62  ;;  %v496_v50 = vsel %vm891_vm12, %v357_v41, %v445_v53 }
 0x193   :  { %548 = vst.msk [vmem:[%s1389_s1 + $0x98] sm:$0xff] %vm528_vm13, %v483_v10  ;;  %v447_v54 = vsel %vm881_vm11, %v340_v32, %v397_v34  ;;  %v497_v43 = vsel %vm891_vm12, %v365_v44, %v445_v53  ;;  %v320_v62 = vperm.slane %v312_v37, 0  ;;  %v328_v55 = vperm.slane %v312_v37, 1 }
 0x194   :  { %549 = vst.msk [vmem:[%s1389_s1 + $0xa0] sm:$0xff] %vm528_vm13, %v484_v13  ;;  %v498_v56 = vsel %vm891_vm12, %v357_v41, %v446_v48  ;;  %v336_v58 = vperm.slane %v312_v37, 2  ;;  %v344_v59 = vperm.slane %v312_v37, 3  ;;  %v393_v60 = vsel %vm352_vm10, %v312_v37, %v377_v45 }
 0x195   :  { %550 = vst.msk [vmem:[%s1389_s1 + $0xa8] sm:$0xff] %vm528_vm13, %v485_v15  ;;  %v448_v61 = vsel %vm881_vm11, %v348_v33, %v397_v34  ;;  %v499_v63 = vsel %vm891_vm12, %v365_v44, %v446_v48  ;;  %v319_v1 = vsel %vm311_vm7, %v310_v49, %v249_v52  ;;  %v500_v2 = vsel %vm891_vm12, %v357_v41, %v447_v54 }
 0x196   :  { %551 = vst.msk [vmem:[%s1389_s1 + $0xb0] sm:$0xff] %vm528_vm13, %v486_v16  ;;  %v501_v3 = vsel %vm891_vm12, %v365_v44, %v447_v54  ;;  %v353_v4 = vsel %vm352_vm10, %v320_v62, %v328_v55  ;;  %v429_v5 = vsel %vm881_vm11, %v320_v62, %v393_v60  ;;  %v502_v6 = vsel %vm891_vm12, %v357_v41, %v448_v61 }
 0x197   :  { %552 = vst.msk [vmem:[%s1389_s1 + $0xb8] sm:$0xff] %vm528_vm13, %v487_v20  ;;  %v361_v7 = vsel %vm352_vm10, %v336_v58, %v344_v59  ;;  %v384_v38 = vrot.slane %v319_v1, 4  ;;  %v503_v9 = vsel %vm891_vm12, %v365_v44, %v448_v61  ;;  %v430_v10 = vsel %vm881_vm11, %v328_v55, %v393_v60  ;;  %v247_v34 = vpop.permute.xlu0 %246 }
 0x198   :  { %569 = vst.msk [vmem:[%s1389_s1 + $0x140] sm:$0xff] %vm528_vm13, %v504_v22  ;;  %v464_v36 = vsel %vm891_vm12, %v353_v4, %v429_v5  ;;  %v431_v51 = vsel %vm881_vm11, %v336_v58, %v393_v60  ;;  %v465_v11 = vsel %vm891_vm12, %v361_v7, %v429_v5  ;;  %v327_v12 = vperm.slane %v319_v1, 0 }
 0x199   :  { %570 = vst.msk [vmem:[%s1389_s1 + $0x148] sm:$0xff] %vm528_vm13, %v505_v25  ;;  %v335_v13 = vperm.slane %v319_v1, 1  ;;  %v466_v14 = vsel %vm891_vm12, %v353_v4, %v430_v10  ;;  %v343_v15 = vperm.slane %v319_v1, 2  ;;  %v351_v16 = vperm.slane %v319_v1, 3 }
 0x19a   :  { %571 = vst.msk [vmem:[%s1389_s1 + $0x150] sm:$0xff] %vm528_vm13, %v506_v30  ;;  %v400_v17 = vsel %vm352_vm10, %v319_v1, %v384_v38  ;;  %v432_v18 = vsel %vm881_vm11, %v344_v59, %v393_v60  ;;  %v467_v19 = vsel %vm891_vm12, %v361_v7, %v430_v10  ;;  %v315_v20 = vsel %vm311_vm7, %v860_v57, %v241_v8 }
 0x19b   :  { %572 = vst.msk [vmem:[%s1389_s1 + $0x158] sm:$0xff] %vm528_vm13, %v507_v27  ;;  %v468_v21 = vsel %vm891_vm12, %v353_v4, %v431_v51  ;;  %v469_v22 = vsel %vm891_vm12, %v361_v7, %v431_v51  ;;  %v360_v23 = vsel %vm352_vm10, %v327_v12, %v335_v13  ;;  %v457_v57 = vsel %vm881_vm11, %v327_v12, %v400_v17 }
 0x19c   :  { %573 = vst.msk [vmem:[%s1389_s1 + $0x160] sm:$0xff] %vm528_vm13, %v508_v39  ;;  %v470_v24 = vsel %vm891_vm12, %v353_v4, %v432_v18  ;;  %v368_v25 = vsel %vm352_vm10, %v343_v15, %v351_v16  ;;  %v380_v28 = vrot.slane %v315_v20, 4  ;;  %v471_v29 = vsel %vm891_vm12, %v361_v7, %v432_v18 }
 0x19d   :  { %574 = vst.msk [vmem:[%s1389_s1 + $0x168] sm:$0xff] %vm528_vm13, %v509_v40  ;;  %v458_v30 = vsel %vm881_vm11, %v335_v13, %v400_v17  ;;  %v309_v32 = vsel %vm302_vm6, %v852_v46, %v867_v0  ;;  %v520_v33 = vsel %vm891_vm12, %v360_v23, %v457_v57  ;;  %v459_v35 = vsel %vm881_vm11, %v343_v15, %v400_v17 }
 0x19e   :  { %575 = vst.msk [vmem:[%s1389_s1 + $0x170] sm:$0xff] %vm528_vm13, %v510_v42  ;;  %v521_v46 = vsel %vm891_vm12, %v368_v25, %v457_v57  ;;  %v323_v0 = vperm.slane %v315_v20, 0  ;;  %v331_v27 = vperm.slane %v315_v20, 1  ;;  %v522_v37 = vsel %vm891_vm12, %v360_v23, %v458_v30 }
 0x19f   :  { %576 = vst.msk [vmem:[%s1389_s1 + $0x178] sm:$0xff] %vm528_vm13, %v511_v47  ;;  %v339_v39 = vperm.slane %v315_v20, 2  ;;  %v347_v40 = vperm.slane %v315_v20, 3  ;;  %v396_v41 = vsel %vm352_vm10, %v315_v20, %v380_v28  ;;  %v460_v53 = vsel %vm881_vm11, %v351_v16, %v400_v17 }
 0x1a0   :  { %561 = vst.msk [vmem:[%s1389_s1 + $0x100] sm:$0xff] %vm528_vm13, %v496_v50  ;;  %v523_v42 = vsel %vm891_vm12, %v368_v25, %v458_v30  ;;  %v318_v44 = vsel %vm311_vm7, %v309_v32, %v247_v34  ;;  %v524_v45 = vsel %vm891_vm12, %v360_v23, %v459_v35  ;;  %v525_v47 = vsel %vm891_vm12, %v368_v25, %v459_v35 }
 0x1a1   :  { %562 = vst.msk [vmem:[%s1389_s1 + $0x108] sm:$0xff] %vm528_vm13, %v497_v43  ;;  %v356_v48 = vsel %vm352_vm10, %v323_v0, %v331_v27  ;;  %v441_v49 = vsel %vm881_vm11, %v323_v0, %v396_v41  ;;  %v526_v50 = vsel %vm891_vm12, %v360_v23, %v460_v53  ;;  %v364_v52 = vsel %vm352_vm10, %v339_v39, %v347_v40 }
 0x1a2   :  { %563 = vst.msk [vmem:[%s1389_s1 + $0x110] sm:$0xff] %vm528_vm13, %v498_v56  ;;  %v383_v54 = vrot.slane %v318_v44, 4  ;;  %v527_v43 = vsel %vm891_vm12, %v368_v25, %v460_v53  ;;  %v442_v62 = vsel %vm881_vm11, %v331_v27, %v396_v41  ;;  %v488_v55 = vsel %vm891_vm12, %v356_v48, %v441_v49 }
 0x1a3   :  { %564 = vst.msk [vmem:[%s1389_s1 + $0x118] sm:$0xff] %vm528_vm13, %v499_v63  ;;  %v443_v56 = vsel %vm881_vm11, %v339_v39, %v396_v41  ;;  %v489_v58 = vsel %vm891_vm12, %v364_v52, %v441_v49  ;;  %v326_v59 = vperm.slane %v318_v44, 0  ;;  %v334_v60 = vperm.slane %v318_v44, 1 }
 0x1a4   :  { %565 = vst.msk [vmem:[%s1389_s1 + $0x120] sm:$0xff] %vm528_vm13, %v500_v2  ;;  %v490_v61 = vsel %vm891_vm12, %v356_v48, %v442_v62  ;;  %v342_v63 = vperm.slane %v318_v44, 2  ;;  %v350_v1 = vperm.slane %v318_v44, 3  ;;  %v399_v2 = vsel %vm352_vm10, %v318_v44, %v383_v54 }
 0x1a5   :  { %566 = vst.msk [vmem:[%s1389_s1 + $0x128] sm:$0xff] %vm528_vm13, %v501_v3  ;;  %v444_v3 = vsel %vm881_vm11, %v347_v40, %v396_v41  ;;  %v491_v4 = vsel %vm891_vm12, %v364_v52, %v442_v62  ;;  %v492_v5 = vsel %vm891_vm12, %v356_v48, %v443_v56  ;;  %v359_v7 = vsel %vm352_vm10, %v326_v59, %v334_v60 }
 0x1a6   :  { %567 = vst.msk [vmem:[%s1389_s1 + $0x130] sm:$0xff] %vm528_vm13, %v502_v6  ;;  %v493_v6 = vsel %vm891_vm12, %v364_v52, %v443_v56  ;;  %v453_v38 = vsel %vm881_vm11, %v326_v59, %v399_v2  ;;  %v494_v8 = vsel %vm891_vm12, %v356_v48, %v444_v3  ;;  %v495_v10 = vsel %vm891_vm12, %v364_v52, %v444_v3 }
 0x1a7   :  { %568 = vst.msk [vmem:[%s1389_s1 + $0x138] sm:$0xff] %vm528_vm13, %v503_v9  ;;  %v367_v9 = vsel %vm352_vm10, %v342_v63, %v350_v1  ;;  %v512_v51 = vsel %vm891_vm12, %v359_v7, %v453_v38 }
 0x1a8   :  { %529 = vst.msk [vmem:[%s1389_s1] sm:$0xff] %vm528_vm13, %v464_v36  ;;  %v454_v36 = vsel %vm881_vm11, %v334_v60, %v399_v2  ;;  %v513_v12 = vsel %vm891_vm12, %v367_v9, %v453_v38 }
 0x1a9   :  { %530 = vst.msk [vmem:[%s1389_s1 + $0x8] sm:$0xff] %vm528_vm13, %v465_v11  ;;  %v455_v11 = vsel %vm881_vm11, %v342_v63, %v399_v2  ;;  %v514_v13 = vsel %vm891_vm12, %v359_v7, %v454_v36  ;;  %v515_v15 = vsel %vm891_vm12, %v367_v9, %v454_v36 }
 0x1aa   :  { %531 = vst.msk [vmem:[%s1389_s1 + $0x10] sm:$0xff] %vm528_vm13, %v466_v14  ;;  %v456_v14 = vsel %vm881_vm11, %v350_v1, %v399_v2  ;;  %v516_v16 = vsel %vm891_vm12, %v359_v7, %v455_v11  ;;  %v517_v26 = vsel %vm891_vm12, %v367_v9, %v455_v11 }
 0x1ab   :  { %532 = vst.msk [vmem:[%s1389_s1 + $0x18] sm:$0xff] %vm528_vm13, %v467_v19  ;;  %v518_v17 = vsel %vm891_vm12, %v359_v7, %v456_v14  ;;  %v519_v18 = vsel %vm891_vm12, %v367_v9, %v456_v14 }
 0x1ac   :  { %533 = vst.msk [vmem:[%s1389_s1 + $0x20] sm:$0xff] %vm528_vm13, %v468_v21 }
 0x1ad   :  { %534 = vst.msk [vmem:[%s1389_s1 + $0x28] sm:$0xff] %vm528_vm13, %v469_v22 }
 0x1ae   :  { %535 = vst.msk [vmem:[%s1389_s1 + $0x30] sm:$0xff] %vm528_vm13, %v470_v24 }
 0x1af   :  { %536 = vst.msk [vmem:[%s1389_s1 + $0x38] sm:$0xff] %vm528_vm13, %v471_v29 }
 0x1b0   :  { %585 = vst.msk [vmem:[%s1389_s1 + $0x1c0] sm:$0xff] %vm528_vm13, %v520_v33 }
 0x1b1   :  { %586 = vst.msk [vmem:[%s1389_s1 + $0x1c8] sm:$0xff] %vm528_vm13, %v521_v46 }
 0x1b2   :  { %587 = vst.msk [vmem:[%s1389_s1 + $0x1d0] sm:$0xff] %vm528_vm13, %v522_v37 }
 0x1b3   :  { %588 = vst.msk [vmem:[%s1389_s1 + $0x1d8] sm:$0xff] %vm528_vm13, %v523_v42 }
 0x1b4   :  { %589 = vst.msk [vmem:[%s1389_s1 + $0x1e0] sm:$0xff] %vm528_vm13, %v524_v45 }
 0x1b5   :  { %590 = vst.msk [vmem:[%s1389_s1 + $0x1e8] sm:$0xff] %vm528_vm13, %v525_v47 }
 0x1b6   :  { %591 = vst.msk [vmem:[%s1389_s1 + $0x1f0] sm:$0xff] %vm528_vm13, %v526_v50 }
 0x1b7   :  { %592 = vst.msk [vmem:[%s1389_s1 + $0x1f8] sm:$0xff] %vm528_vm13, %v527_v43 }
 0x1b8   :  { %553 = vst.msk [vmem:[%s1389_s1 + $0xc0] sm:$0xff] %vm528_vm13, %v488_v55 }
 0x1b9   :  { %554 = vst.msk [vmem:[%s1389_s1 + $0xc8] sm:$0xff] %vm528_vm13, %v489_v58 }
 0x1ba   :  { %555 = vst.msk [vmem:[%s1389_s1 + $0xd0] sm:$0xff] %vm528_vm13, %v490_v61 }
 0x1bb   :  { %556 = vst.msk [vmem:[%s1389_s1 + $0xd8] sm:$0xff] %vm528_vm13, %v491_v4 }
 0x1bc   :  { %557 = vst.msk [vmem:[%s1389_s1 + $0xe0] sm:$0xff] %vm528_vm13, %v492_v5 }
 0x1bd   :  { %558 = vst.msk [vmem:[%s1389_s1 + $0xe8] sm:$0xff] %vm528_vm13, %v493_v6 }
 0x1be   :  { %559 = vst.msk [vmem:[%s1389_s1 + $0xf0] sm:$0xff] %vm528_vm13, %v494_v8 }
 0x1bf   :  { %560 = vst.msk [vmem:[%s1389_s1 + $0xf8] sm:$0xff] %vm528_vm13, %v495_v10 }
 0x1c0   :  { %577 = vst.msk [vmem:[%s1389_s1 + $0x180] sm:$0xff] %vm528_vm13, %v512_v51 }
 0x1c1   :  { %578 = vst.msk [vmem:[%s1389_s1 + $0x188] sm:$0xff] %vm528_vm13, %v513_v12 }
 0x1c2   :  { %579 = vst.msk [vmem:[%s1389_s1 + $0x190] sm:$0xff] %vm528_vm13, %v514_v13 }
 0x1c3   :  { %580 = vst.msk [vmem:[%s1389_s1 + $0x198] sm:$0xff] %vm528_vm13, %v515_v15 }
 0x1c4   :  { %581 = vst.msk [vmem:[%s1389_s1 + $0x1a0] sm:$0xff] %vm528_vm13, %v516_v16 }
 0x1c5   :  { %582 = vst.msk [vmem:[%s1389_s1 + $0x1a8] sm:$0xff] %vm528_vm13, %v517_v26 }
 0x1c6   :  { %583 = vst.msk [vmem:[%s1389_s1 + $0x1b0] sm:$0xff] %vm528_vm13, %v518_v17 }
 0x1c7   :  { %584 = vst.msk [vmem:[%s1389_s1 + $0x1b8] sm:$0xff] %vm528_vm13, %v519_v18 }
 0x1c8   :  { %597 = vsyncpa [#allocation3], 1 }

</bundles_post_ra>
